<compile_context>
chip_gen: v7x
topology: tpu7x:2x2x1
jax: 0.10.0
libtpu: 0.0.40
codegen_flags: <defaults>
</compile_context>

<pallas_src>
import functools

import jax
import jax.numpy as jnp
import numpy as np
from jax.experimental import pallas as pl
from jax.experimental.pallas import tpu as pltpu


def _round_up(x, m):
    return (x + m - 1) // m * m


def _itemsize(dt):
    return jnp.dtype(dt).itemsize


def _vmem_limit_bytes(buffer_bytes):
    """Per-generation VMEM limit: scale with need, stay below ~75% of physical VMEM."""
    try:
        cap = int(getattr(pltpu.get_tpu_info(), "vmem_capacity_bytes", 64 << 20))
    except Exception:  # pragma: no cover - conservative fallback (v7x-safe)
        cap = 64 << 20
    want = max(2 * buffer_bytes + (8 << 20), 32 << 20)
    return int(max(min(want, int(cap * 0.75)), buffer_bytes + (2 << 20)))


# ---------------------------------------------------------------------------
# Pre-pass kernel: level-invariant input convolution, once per distinct dilation.
# ---------------------------------------------------------------------------
def _input_conv_kernel(dil_ref, xpad_ref, w1_ref, b2_ref, out_ref, *, k, T, pad_rows):
    # xpad_ref: (pad_rows+T, Cp) zero-left-padded input (one batch row, lane-padded)
    # w1_ref  : (k, Cp, 4*Hp)    per-tap weights
    # b2_ref  : (1, 4*Hp)        bias (folded in here, added once)
    # out_ref : (T, 4*Hp)        xconv[b, dil_slot] = conv1d(x, w1, dilation) + bias
    d = dil_ref[pl.program_id(1)]
    g4 = w1_ref.shape[-1]
    acc = jnp.zeros((T, g4), jnp.float32)
    for j in range(k):                       # k accumulating matmuls (no concat copy)
        shift = k - 1 - j
        start = pad_rows if shift == 0 else pad_rows - shift * d
        tap = xpad_ref[pl.ds(start, T), :]
        acc = acc + jnp.dot(tap, w1_ref[j], preferred_element_type=jnp.float32)
    out_ref[...] = (acc + b2_ref[...]).astype(out_ref.dtype)


def _make_input_conv_call(n_dil, B, T, Cp, G4, k, pad_rows, compute_dtype):
    kern = functools.partial(_input_conv_kernel, k=k, T=T, pad_rows=pad_rows)
    cb = _itemsize(compute_dtype)
    buf_bytes = (2 * (pad_rows + T) * Cp * cb        # xpad (double-buffered)
                 + 2 * k * Cp * G4 * cb              # w1
                 + 2 * G4 * 4                        # bias
                 + 2 * T * G4 * cb)                  # out block
    return pl.pallas_call(
        kern,
        grid_spec=pltpu.PrefetchScalarGridSpec(
            num_scalar_prefetch=1,                   # distinct dilation values (SMEM)
            grid=(B, n_dil),                         # b outer -> xpad resident over dil
            in_specs=[
                pl.BlockSpec((None, pad_rows + T, Cp), lambda b, di, dil: (b, 0, 0)),
                pl.BlockSpec((k, Cp, G4), lambda b, di, dil: (0, 0, 0)),   # w1 resident
                pl.BlockSpec((1, G4), lambda b, di, dil: (0, 0)),          # bias resident
            ],
            out_specs=pl.BlockSpec((None, None, T, G4),
                                   lambda b, di, dil: (b, di, 0, 0)),
        ),
        out_shape=jax.ShapeDtypeStruct((B, n_dil, T, G4), compute_dtype),
        compiler_params=pltpu.CompilerParams(
            dimension_semantics=("parallel", "arbitrary"),
            vmem_limit_bytes=_vmem_limit_bytes(buf_bytes)),
    )


# ---------------------------------------------------------------------------
# Fused level loop: all nlevels in one kernel, ht/ct resident in VMEM scratch.
# ---------------------------------------------------------------------------
def _trellis_levels_kernel(dil_idx_ref, dil_val_ref,               # scalar prefetch (SMEM)
                           xconv_ref, hid_ref, cell_ref, w2_ref,   # inputs
                           *refs,                                  # outputs + scratch
                           k, T, Hp, pad_rows, c_rows, aux_freq, has_aux):
    if has_aux:
        ht_out_ref, ct_out_ref, aux_ref, zpad_ref, cpad_ref = refs
    else:
        ht_out_ref, ct_out_ref, zpad_ref, cpad_ref = refs
        aux_ref = None

    level = pl.program_id(1)
    d = dil_val_ref[level]

    # Level 0 of each batch row: (re)initialise the padded state buffers.
    #   zpad rows [0, pad_rows)  = hid   (causal fill of the hidden conv, written ONCE)
    #   zpad rows [pad_rows, ..) = ht    (starts at 0, per transform_input)
    #   cpad rows [0, c_rows)    = cell  (causal fill of the d-shifted cell state)
    #   cpad rows [c_rows, ..)   = ct    (starts at 0)
    @pl.when(level == 0)
    def _init():
        if pad_rows > 0:
            zpad_ref[:pad_rows, :] = jnp.broadcast_to(
                hid_ref[...], (pad_rows, Hp)).astype(zpad_ref.dtype)
        zpad_ref[pad_rows:, :] = jnp.zeros((T, Hp), zpad_ref.dtype)
        cpad_ref[:c_rows, :] = jnp.broadcast_to(cell_ref[...], (c_rows, Hp))
        cpad_ref[c_rows:, :] = jnp.zeros((T, Hp), cpad_ref.dtype)

    # Hoisted input conv for this level's dilation: all n_dil slots are VMEM resident
    # across the whole level loop (block index depends only on the batch row).
    acc = xconv_ref[dil_idx_ref[level]].astype(jnp.float32)         # (T, 4*Hp) f32

    # Weight-tied dilated hidden conv: k accumulating MXU matmuls over dynamically
    # shifted windows of the padded state (no lane-dim concat, no padded copies).
    for j in range(k):
        shift = k - 1 - j
        start = pad_rows if shift == 0 else pad_rows - shift * d
        tap = zpad_ref[pl.ds(start, T), :]                          # (T, Hp) compute dtype
        acc = acc + jnp.dot(tap, w2_ref[j], preferred_element_type=jnp.float32)

    # LSTM-style gates (channel order matches the PyTorch module); gate math in f32.
    it = jax.nn.sigmoid(acc[:, 0 * Hp:1 * Hp])
    ot = jax.nn.sigmoid(acc[:, 1 * Hp:2 * Hp])
    gt = jnp.tanh(acc[:, 2 * Hp:3 * Hp])
    ft = jax.nn.sigmoid(acc[:, 3 * Hp:4 * Hp])

    ct_1 = cpad_ref[pl.ds(c_rows - d, T), :]   # ct_1[t] = cell (t<d) else ct_prev[t-d]
    ct = ft * ct_1 + it * gt                   # cell recurrence stays f32
    ht = ot * jnp.tanh(ct)

    # In-place state update: these stores ARE the next level's input (sublane aligned).
    zpad_ref[pad_rows:, :] = ht.astype(zpad_ref.dtype)
    cpad_ref[c_rows:, :] = ct

    if has_aux:
        # NOTE: if nlevels % aux_freq != 0 the clamped aux index revisits the last slot
        # for trailing levels; the boundary-level write stays in the resident buffer so
        # the writeback is still the correct value (level axis is strictly sequential).
        @pl.when(level % aux_freq == aux_freq - 1)
        def _aux():
            aux_ref[...] = ht

    @pl.when(level == pl.num_programs(1) - 1)
    def _final():
        ht_out_ref[...] = ht
        ct_out_ref[...] = ct[T - 1:T, :]       # only the last timestep is consumed


def _make_levels_call(n_dil, B, T, Hp, G4, k, nlevels, aux_freq, n_aux,
                      pad_rows, c_rows, compute_dtype):
    has_aux = n_aux > 0
    kern = functools.partial(
        _trellis_levels_kernel, k=k, T=T, Hp=Hp, pad_rows=pad_rows, c_rows=c_rows,
        aux_freq=aux_freq, has_aux=has_aux)

    in_specs = [
        # All n_dil hoisted input-conv blocks for this batch row: block index depends
        # only on b -> DMA'd once per batch row, VMEM resident across every level.
        pl.BlockSpec((None, n_dil, T, G4), lambda b, l, dil_idx, dil_val: (b, 0, 0, 0)),
        pl.BlockSpec((None, 1, Hp), lambda b, l, dil_idx, dil_val: (b, 0, 0)),   # hid
        pl.BlockSpec((None, 1, Hp), lambda b, l, dil_idx, dil_val: (b, 0, 0)),   # cell
        pl.BlockSpec((k, Hp, G4), lambda b, l, dil_idx, dil_val: (0, 0, 0)),     # w2 resident
    ]
    out_shape = [jax.ShapeDtypeStruct((B, T, Hp), jnp.float32),
                 jax.ShapeDtypeStruct((B, 1, Hp), jnp.float32)]
    out_specs = [pl.BlockSpec((None, T, Hp), lambda b, l, dil_idx, dil_val: (b, 0, 0)),
                 pl.BlockSpec((None, 1, Hp), lambda b, l, dil_idx, dil_val: (b, 0, 0))]
    if has_aux:
        out_shape.append(jax.ShapeDtypeStruct((n_aux, B, T, Hp), jnp.float32))
        out_specs.append(pl.BlockSpec(
            (None, None, T, Hp),
            lambda b, l, dil_idx, dil_val: (jnp.minimum(l // aux_freq, n_aux - 1), b, 0, 0)))

    cb = _itemsize(compute_dtype)
    buf_bytes = (2 * n_dil * T * G4 * cb             # xconv slots (double-buffered)
                 + 2 * 2 * Hp * 4                    # hid + cell
                 + 2 * k * Hp * G4 * cb              # w2
                 + 2 * T * Hp * 4 + 2 * Hp * 4       # ht_out + ct_out
                 + (2 * T * Hp * 4 if has_aux else 0)
                 + (pad_rows + T) * Hp * cb          # zpad scratch
                 + (c_rows + T) * Hp * 4)            # cpad scratch (f32)

    return pl.pallas_call(
        kern,
        grid_spec=pltpu.PrefetchScalarGridSpec(
            num_scalar_prefetch=2,                   # per-level dil index + dil value
            grid=(B, nlevels),
            in_specs=in_specs,
            out_specs=tuple(out_specs),
            scratch_shapes=[
                pltpu.VMEM((pad_rows + T, Hp), compute_dtype),   # hid-padded hidden state
                pltpu.VMEM((c_rows + T, Hp), jnp.float32),       # cell-padded cell state
            ]),
        out_shape=tuple(out_shape),
        compiler_params=pltpu.CompilerParams(
            # Batch axis shardable across TensorCores; level axis carries the
            # VMEM-resident state so it must stay strictly sequential.
            dimension_semantics=("parallel", "arbitrary"),
            vmem_limit_bytes=_vmem_limit_bytes(buf_bytes)),
    )


# ---------------------------------------------------------------------------
# Module wrapper
# ---------------------------------------------------------------------------
class TrellisNetPallas:
    """TrellisNet forward pass on TPU Pallas."""

    def __init__(self, ninp, nhid, nout, nlevels=8, kernel_size=2, dropouth=0.0,
                 wnorm=True, aux_frequency=4, dilation=(1,), key=None,
                 compute_dtype=jnp.bfloat16):
        self.ninp, self.nhid, self.nout = ninp, nhid, nout
        self.h_size = H = nhid + nout
        self.nlevels = nlevels
        self.kernel_size = k = kernel_size
        self.aux_frequency = aux_frequency
        self.dilation = tuple(dilation)
        self.compute_dtype = compute_dtype

        # Lane-dense layout: channel dims rounded up to multiples of 128 so every gate
        # slice / state store is a full-lane op.  Padded channels are exactly zero.
        self.Hp = Hp = _round_up(H, 128)
        self.ninp_p = ninp_p = _round_up(ninp, 128)
        G4 = 4 * Hp

        key = jax.random.PRNGKey(0) if key is None else key
        k1, k2, k3 = jax.random.split(key, 3)
        bound = 0.01
        # PyTorch Conv1d weight layout: (out_ch, in_ch, kernel); init ~ N(0, 0.01).
        self.weight1 = bound * jax.random.normal(k1, (4 * H, ninp, k), jnp.float32)
        self.weight2 = bound * jax.random.normal(k2, (4 * H, H, k), jnp.float32)
        self.bias2 = bound * jax.random.normal(k3, (4 * H,), jnp.float32)

        # Kernel layouts: (k, in_ch_padded, 4*Hp) so each tap is one accumulating matmul;
        # each gate's H output channels get their own Hp lane slot.
        w1_g = jnp.transpose(self.weight1, (2, 1, 0)).reshape(k, ninp, 4, H)
        w1_pad = jnp.zeros((k, ninp_p, 4, Hp), jnp.float32).at[:, :ninp, :, :H].set(w1_g)
        self.w1_k = w1_pad.reshape(k, ninp_p, G4).astype(compute_dtype)
        w2_g = jnp.transpose(self.weight2, (2, 1, 0)).reshape(k, H, 4, H)
        w2_pad = jnp.zeros((k, Hp, 4, Hp), jnp.float32).at[:, :H, :, :H].set(w2_g)
        self.w2_k = w2_pad.reshape(k, Hp, G4).astype(compute_dtype)
        self.b2_pad = (jnp.zeros((4, Hp), jnp.float32)
                       .at[:, :H].set(self.bias2.reshape(4, H)).reshape(1, G4))

        # Static per-level dilation schedule.
        lev_d = [self.dilation[i % len(self.dilation)] for i in range(nlevels)]
        self._distinct = sorted(set(lev_d))
        self.n_dil = len(self._distinct)
        self.dil_idx = jnp.array([self._distinct.index(d) for d in lev_d], jnp.int32)
        self.dil_val = jnp.array(lev_d, jnp.int32)
        self.dil_distinct = jnp.array(self._distinct, jnp.int32)
        self.d_max = max(lev_d)
        # Round causal-fill rows up to a sublane multiple so per-level state stores and
        # the shift-0 tap read are (8,*)-aligned; extra rows are just more causal fill.
        self.pad_rows = _round_up((k - 1) * self.d_max, 8)
        self.c_rows = _round_up(self.d_max, 8)

    def __call__(self, X, hc, aux=True):
        ninp, H, nout, k = self.ninp, self.h_size, self.nout, self.kernel_size
        Hp, ninp_p = self.Hp, self.ninp_p
        G4 = 4 * Hp
        pad_rows, c_rows = self.pad_rows, self.c_rows
        B, _, T = X.shape
        cd = self.compute_dtype

        use_aux = bool(aux) and self.aux_frequency > 0
        n_aux = self.nlevels // self.aux_frequency if use_aux else 0
        aux_freq = self.aux_frequency if use_aux else 1

        # PyTorch NCW -> time-major (B, T, C); channels zero-padded to lane-dense sizes.
        x = jnp.transpose(X, (0, 2, 1))
        xpad = jnp.zeros((B, pad_rows + T, ninp_p), cd).at[:, pad_rows:, :ninp].set(
            x.astype(cd))
        hid = jnp.zeros((B, 1, Hp), jnp.float32).at[:, :, :H].set(
            jnp.transpose(hc[0], (0, 2, 1)).astype(jnp.float32))
        cell = jnp.zeros((B, 1, Hp), jnp.float32).at[:, :, :H].set(
            jnp.transpose(hc[1], (0, 2, 1)).astype(jnp.float32))

        # (1) Hoisted, level-invariant input conv: once per distinct dilation.
        xconv = _make_input_conv_call(self.n_dil, B, T, ninp_p, G4, k, pad_rows, cd)(
            self.dil_distinct, xpad, self.w1_k, self.b2_pad)      # (B, n_dil, T, G4)

        # (2) All nlevels fused into one pallas_call; ht/ct, w2 and xconv stay resident.
        outs = _make_levels_call(self.n_dil, B, T, Hp, G4, k, self.nlevels, aux_freq,
                                 n_aux, pad_rows, c_rows, cd)(
            self.dil_idx, self.dil_val, xconv, hid, cell, self.w2_k)
        ht_full, ct_last = outs[0], outs[1]

        out = ht_full[:, :, H - nout:H]                               # (B, T, nout)
        hc_out = (jnp.transpose(ht_full[:, -1:, :H], (0, 2, 1)),      # (B, H, 1)
                  jnp.transpose(ct_last[:, :, :H], (0, 2, 1)))        # (B, H, 1)
        if n_aux > 0:
            aux_full = outs[2]                                        # (n_aux, B, T, Hp)
            aux_outs = jnp.transpose(aux_full[:, :, :, H - nout:H], (1, 0, 2, 3))
        else:
            aux_outs = None
        return out, hc_out, aux_outs


# ---------------------------------------------------------------------------
# Pure-JAX reference (PyTorch NCW layout) for verification.
# ---------------------------------------------------------------------------
def reference_forward(X, hc, model):
    ninp, H, nout, k = model.ninp, model.h_size, model.nout, model.kernel_size
    w1, w2, b2 = model.weight1, model.weight2, model.bias2
    hid, cell = hc
    B, _, T = X.shape
    ht = jnp.zeros((B, H, T), jnp.float32)
    ct = jnp.zeros((B, H, T), jnp.float32)
    Z = jnp.concatenate([X, ht], axis=1)
    aux = []
    dn = ('NCH', 'OIH', 'NCH')
    for i in range(model.nlevels):
        d = model.dilation[i % len(model.dilation)]
        pad = (k - 1) * d
        x1 = jnp.pad(Z[:, :ninp], ((0, 0), (0, 0), (pad, 0)))
        z1 = jnp.concatenate([jnp.tile(hid, (1, 1, pad)), Z[:, ninp:]], axis=2)
        conv = lambda a, w: jax.lax.conv_general_dilated(
            a, w, window_strides=(1,), padding='VALID', rhs_dilation=(d,),
            dimension_numbers=dn, precision=jax.lax.Precision.HIGHEST)
        o = conv(x1, w1) + conv(z1, w2) + b2[None, :, None]
        ct1 = jnp.concatenate([jnp.tile(cell, (1, 1, d)), ct[:, :, :T - d]], axis=2)
        it = jax.nn.sigmoid(o[:, :H]); ot = jax.nn.sigmoid(o[:, H:2 * H])
        gt = jnp.tanh(o[:, 2 * H:3 * H]); ft = jax.nn.sigmoid(o[:, 3 * H:4 * H])
        ct = ft * ct1 + it * gt
        ht_new = ot * jnp.tanh(ct)
        Z = jnp.concatenate([Z[:, :ninp], ht_new], axis=1)
        if i % model.aux_frequency == model.aux_frequency - 1:
            aux.append(Z[:, -nout:][None])
    out = jnp.transpose(Z[:, -nout:], (0, 2, 1))
    hc_out = (Z[:, ninp:, -1:], ct[:, :, -1:])
    aux_outs = jnp.transpose(jnp.concatenate(aux, 0), (1, 0, 3, 2))
    return out, hc_out, aux_outs


if __name__ == "__main__":
    key = jax.random.PRNGKey(0)
    kx, kh, kc, kw = jax.random.split(key, 4)

    B, ninp, nhid, nout, T = 2, 8, 12, 4, 8
    H = nhid + nout  # 16

    X = jax.random.normal(kx, (B, ninp, T), jnp.float32)
    hid0 = jax.random.normal(kh, (B, H, 1), jnp.float32)
    cell0 = jax.random.normal(kc, (B, H, 1), jnp.float32)

    # f32 MXU path: tight check against the pure-JAX reference.
    model = TrellisNetPallas(ninp, nhid, nout, nlevels=8, kernel_size=2,
                             aux_frequency=4, dilation=(1, 2), key=kw,
                             compute_dtype=jnp.float32)
    out, (h_last, c_last), aux_outs = model(X, (hid0, cell0), aux=True)
    jax.block_until_ready((out, h_last, c_last, aux_outs))

    assert out.shape == (B, T, nout)
    assert h_last.shape == (B, H, 1) and c_last.shape == (B, H, 1)
    assert aux_outs.shape == (B, 2, T, nout)

    ref_out, (ref_h, ref_c), ref_aux = reference_forward(X, (hid0, cell0), model)
    np.testing.assert_allclose(np.asarray(out), np.asarray(ref_out), rtol=1e-3, atol=2e-4)
    np.testing.assert_allclose(np.asarray(h_last), np.asarray(ref_h), rtol=1e-3, atol=2e-4)
    np.testing.assert_allclose(np.asarray(c_last), np.asarray(ref_c), rtol=1e-3, atol=2e-4)
    np.testing.assert_allclose(np.asarray(aux_outs), np.asarray(ref_aux), rtol=1e-3, atol=2e-4)

    # bf16-fed MXU path (default; f32 accumulation, f32 cell recurrence + gate math).
    model_bf16 = TrellisNetPallas(ninp, nhid, nout, nlevels=8, kernel_size=2,
                                  aux_frequency=4, dilation=(1, 2), key=kw,
                                  compute_dtype=jnp.bfloat16)
    out_b, (h_b, c_b), aux_b = model_bf16(X, (hid0, cell0), aux=True)
    jax.block_until_ready((out_b, h_b, c_b, aux_b))
    np.testing.assert_allclose(np.asarray(out_b), np.asarray(ref_out), rtol=5e-2, atol=5e-3)
    np.testing.assert_allclose(np.asarray(aux_b), np.asarray(ref_aux), rtol=5e-2, atol=5e-3)

    print("KERNEL_OK")
</pallas_src>

<mosaic_0001>
module attributes {stable_mosaic.version = 11 : i64} {
  func.func @_input_conv_kernel(%arg0: i32, %arg1: i32, %arg2: memref<2xi32, #tpu.memory_space<smem>>, %arg3: memref<1x16x128xf32, #tpu.memory_space<vmem>>, %arg4: memref<2x128x512xf32, #tpu.memory_space<vmem>>, %arg5: memref<1x512xf32, #tpu.memory_space<vmem>>, %arg6: memref<1x1x8x512xf32, #tpu.memory_space<vmem>>) attributes {dimension_semantics = [#tpu.dimension_semantics<parallel>, #tpu.dimension_semantics<arbitrary>], iteration_bounds = array<i64: 2, 2>, scalar_prefetch = 1 : i64, scratch_operands = 0 : i64, tpu.core_type = #tpu.core_type<tc>, window_params = [{transform_indices = @transform_0, window_bounds = array<i64: 1, 16, 128>}, {pipeline_mode = #tpu.pipeline_mode<synchronous>, transform_indices = @transform_1, window_bounds = array<i64: 2, 128, 512>}, {pipeline_mode = #tpu.pipeline_mode<synchronous>, transform_indices = @transform_2, window_bounds = array<i64: 1, 512>}, {transform_indices = @transform_3, window_bounds = array<i64: 1, 1, 8, 512>}]} {
    %0 = arith.index_cast %arg1 : i32 to index
    %1 = memref.load %arg2[%0] : memref<2xi32, #tpu.memory_space<smem>>
    %cst = arith.constant 0.000000e+00 : f32
    %2 = vector.broadcast %cst : f32 to vector<8x512xf32>
    %c1_i32 = arith.constant 1 : i32
    %3 = arith.muli %c1_i32, %1 : i32
    %c8_i32 = arith.constant 8 : i32
    %4 = arith.subi %c8_i32, %3 : i32
    %c0 = arith.constant 0 : index
    %5 = arith.index_cast %4 : i32 to index
    %c0_0 = arith.constant 0 : index
    %6 = vector.load %arg3[%c0, %5, %c0_0] : memref<1x16x128xf32, #tpu.memory_space<vmem>>, vector<1x8x128xf32>
    %7 = vector.shape_cast %6 : vector<1x8x128xf32> to vector<8x128xf32>
    %c0_1 = arith.constant 0 : index
    %c0_2 = arith.constant 0 : index
    %c0_3 = arith.constant 0 : index
    %8 = vector.load %arg4[%c0_1, %c0_2, %c0_3] : memref<2x128x512xf32, #tpu.memory_space<vmem>>, vector<1x128x512xf32>
    %9 = vector.shape_cast %8 : vector<1x128x512xf32> to vector<128x512xf32>
    %cst_4 = arith.constant dense<0.000000e+00> : vector<8x512xf32>
    %10 = tpu.matmul %7, %9, %cst_4 {dimension_numbers = #tpu.dot_dimension_numbers<[1], [0], [0], [1], [0, 0, 1, 1], [], []>} : vector<8x128xf32>, vector<128x512xf32>, vector<8x512xf32> -> vector<8x512xf32>
    %11 = arith.addf %2, %10 : vector<8x512xf32>
    %c0_5 = arith.constant 0 : index
    %c8 = arith.constant 8 : index
    %c0_6 = arith.constant 0 : index
    %12 = vector.load %arg3[%c0_5, %c8, %c0_6] : memref<1x16x128xf32, #tpu.memory_space<vmem>>, vector<1x8x128xf32>
    %13 = vector.shape_cast %12 : vector<1x8x128xf32> to vector<8x128xf32>
    %c1 = arith.constant 1 : index
    %c0_7 = arith.constant 0 : index
    %c0_8 = arith.constant 0 : index
    %14 = vector.load %arg4[%c1, %c0_7, %c0_8] : memref<2x128x512xf32, #tpu.memory_space<vmem>>, vector<1x128x512xf32>
    %15 = vector.shape_cast %14 : vector<1x128x512xf32> to vector<128x512xf32>
    %cst_9 = arith.constant dense<0.000000e+00> : vector<8x512xf32>
    %16 = tpu.matmul %13, %15, %cst_9 {dimension_numbers = #tpu.dot_dimension_numbers<[1], [0], [0], [1], [0, 0, 1, 1], [], []>} : vector<8x128xf32>, vector<128x512xf32>, vector<8x512xf32> -> vector<8x512xf32>
    %17 = arith.addf %11, %16 : vector<8x512xf32>
    %c0_10 = arith.constant 0 : index
    %c0_11 = arith.constant 0 : index
    %18 = vector.load %arg5[%c0_10, %c0_11] : memref<1x512xf32, #tpu.memory_space<vmem>>, vector<1x512xf32>
    %19 = vector.broadcast %18 : vector<1x512xf32> to vector<8x512xf32>
    %20 = arith.addf %17, %19 : vector<8x512xf32>
    %c0_12 = arith.constant 0 : index
    %c0_13 = arith.constant 0 : index
    %c0_14 = arith.constant 0 : index
    %c0_15 = arith.constant 0 : index
    %21 = vector.load %arg6[%c0_12, %c0_13, %c0_14, %c0_15] : memref<1x1x8x512xf32, #tpu.memory_space<vmem>>, vector<1x1x8x512xf32>
    %22 = vector.shape_cast %21 : vector<1x1x8x512xf32> to vector<8x512xf32>
    %23 = vector.shape_cast %20 : vector<8x512xf32> to vector<1x1x8x512xf32>
    tpu.vector_store %arg6[%c0_12, %c0_13, %c0_14, %c0_15], %23 {strides = array<i32>} : memref<1x1x8x512xf32, #tpu.memory_space<vmem>>, vector<1x1x8x512xf32>,
    return
  }
  func.func @transform_0(%arg0: i32, %arg1: i32, %arg2: memref<2xi32, #tpu.memory_space<smem>>) -> (i32, i32, i32) {
    %c0_i32 = arith.constant 0 : i32
    %c0_i32_0 = arith.constant 0 : i32
    %c0_i32_1 = arith.constant 0 : i32
    return %arg0, %c0_i32, %c0_i32_0 : i32, i32, i32
  }
  func.func @transform_1(%arg0: i32, %arg1: i32, %arg2: memref<2xi32, #tpu.memory_space<smem>>) -> (i32, i32, i32) {
    %c0_i32 = arith.constant 0 : i32
    %c0_i32_0 = arith.constant 0 : i32
    %c0_i32_1 = arith.constant 0 : i32
    %c0_i32_2 = arith.constant 0 : i32
    return %c0_i32, %c0_i32_0, %c0_i32_1 : i32, i32, i32
  }
  func.func @transform_2(%arg0: i32, %arg1: i32, %arg2: memref<2xi32, #tpu.memory_space<smem>>) -> (i32, i32) {
    %c0_i32 = arith.constant 0 : i32
    %c0_i32_0 = arith.constant 0 : i32
    %c0_i32_1 = arith.constant 0 : i32
    return %c0_i32, %c0_i32_0 : i32, i32
  }
  func.func @transform_3(%arg0: i32, %arg1: i32, %arg2: memref<2xi32, #tpu.memory_space<smem>>) -> (i32, i32, i32, i32) {
    %c0_i32 = arith.constant 0 : i32
    %c0_i32_0 = arith.constant 0 : i32
    %c0_i32_1 = arith.constant 0 : i32
    return %arg0, %arg1, %c0_i32, %c0_i32_0 : i32, i32, i32, i32
  }
}

</mosaic_0001>

<bundles_post_ra>
// kernel: tpu_custom_call.1
= control target key start
LH: loop header
LB: loop body
LE: loop exit
PB: predicated region body
PF: predicated region fallthrough
CT: control target
= control target key end

     0   :  { %s1580_s0 = inlined_call_operand.hbm [shape: s32[2], index: 0, kind: input, shape index: {}]   ;;  %s1581_s1 = inlined_call_operand.hbm [shape: f32[2,16,128], index: 1, kind: input, shape index: {}]   ;;  %s1582_s2 = inlined_call_operand.hbm [shape: f32[2,128,512], index: 2, kind: input, shape index: {}]   ;;  %s1583_s3 = inlined_call_operand.vmem [shape: f32[1,512], index: 3, kind: input, shape index: {}]   ;;  %s1584_s4 = inlined_call_operand.hbm [shape: f32[2,2,8,512], index: 4, kind: output, shape index: {}]  }
   0x1   :  { %1595 = sst [smem:[#allocation19_spill]] %s1582_s2  ;;  %s1053_s17 = scalar_lea.hbm %s1580_s0, 16 }
   0x2   :  { %p1054_p0 = scmp.ne.s32.totalorder %s1580_s0, %s1053_s17  ;;  %p1057_p1 = scmp.lt.u32.totalorder %s1053_s17, %s1580_s0 }
   0x4   :  { %p1059_p2 = pnand %p1057_p1, %p1054_p0 }
   0x6   :  { %1062 = shalt.err (!%p1059_p2)  }
   0x7   :  { %s1251_s22 = smov [#allocation3]  }
   0x8   :  { %10 = dma.hbm_to_smem %s1580_s0, 16, %s1251_s22, [#allocation2] }
   0x9   :  { %1193 = dma.done.wait [#allocation2], 16 }
   0xa   :  { %1194 = vsyncadd [#allocation2], 4294967280 }
   0xb   :  { %12 = sfence }
   0xc   :  { %13 = vsyncpa [#allocation5], 0 }
   0xd   :  { %15 = vsyncpa [#allocation5 + $0x1], 0 }
   0xe   :  { %16 = vsyncpa [#allocation8], 0 }
   0xf   :  { %17 = vsyncpa [#allocation6], 0 }
  0x10   :  { %19 = vsyncpa [#allocation6 + $0x1], 0  ;;  %s1297_s25 = smov 0   ;;  %s1299_s26 = smov 0  }
  0x11   :  { %s1301_s27 = smov 0   ;;  %s1303_s28 = smov 0  }
  0x12   :  { %s1305_s29 = smov 0   ;;  %s1307_s30 = smov 0  }
  0x13   :  { %s1309_s0 = smov 0   ;;  %s1311_s5 = smov 0  }
  0x14   :  { %s1313_s6 = smov 0   ;;  %s1315_s7 = smov 0  }
  0x15   :  { %s1317_s8 = smov 0  }
  0x16 LB: > { %1596 = sst [smem:[#allocation14_spill]] %s1209_s25  ;;  %s783_s9 = sadd.s32 4294967295, %s1249_s8   ;;  %s1249_s8 = sphi %s1317_s8, %s25_s8   ;;  %s1245_s7 = sphi %s1315_s7, %s1627_s7   ;;  %s1241_s6 = sphi %s1313_s6, %s1618_s6   ;;  %s1237_s5 = sphi %s1311_s5, %s1626_s5   ;;  %s1233_s0 = sphi %s1309_s0, %s1617_s0   ;;  %s1229_s30 = sphi %s1307_s30, %s1625_s30   ;;  %s1225_s29 = sphi %s1305_s29, %s1624_s29   ;;  %s1221_s28 = sphi %s1303_s28, %s1623_s28   ;;  %s1217_s27 = sphi %s1301_s27, %s1622_s27   ;;  %s1213_s26 = sphi %s1299_s26, %s1621_s26   ;;  %s1209_s25 = sphi %s1297_s25, %s1620_s25  }
  0x17   : > { %1597 = sst [smem:[#allocation15_spill]] %s1241_s6  ;;  %s784_s10 = sadd.s32 4294967294, %s1249_s8  }
  0x18   : > { %p57_p3 = scmp.ne.s32.totalorder %s1225_s29, %s1221_s28  ;;  %p1353_p4 = scmp.eq.s32.totalorder %s783_s9, 0 }
  0x19   : > { %s114_s12 = sadd.s32 1, %s1217_s27  ;;  %p124_p5 = scmp.ne.s32.totalorder %s1217_s27, %s1213_s26 }
  0x1a   : > { %s1598_s11 = scalar_select %p1353_p4, 1, 0 }
  0x1b   : > { %p1362_p6 = por %p1353_p4, %p57_p3  ;;  %p125_p7 = scmp.eq.s32.totalorder %s783_s9, 3 }
  0x1c   : > { %p130_p8 = scmp.ne.s32.totalorder %s1213_s26, %s1209_s25  ;;  %p131_p9 = scmp.eq.s32.totalorder %s784_s10, 3 }
  0x1d   : > { %s1599_s13 = scalar_select %p1362_p6, 1, 0 }
  0x1e   : > { %p1368_p10 = por %p125_p7, %p124_p5  ;;  %p785_p11 = scmp.ge.s32.totalorder %s1249_s8, 1 }
  0x1f   : > { %p1373_p12 = por %p131_p9, %p130_p8  ;;  %p138_p13 = scmp.lt.s32.totalorder %s1249_s8, 5 }
  0x20   : > { %s1600_s14 = scalar_select %p1368_p10, 1, 0 }
  0x21   : > { %s1601_s15 = scalar_select %p1373_p12, 1, 0 }
  0x22   : > { %p1378_p0 = pnand %p785_p11, %p138_p13  ;;  %s1252_s17 = smov [#allocation7]  }
  0x23   : > { %1602 = sst [smem:[#allocation16_spill]] %s1601_s15  ;;  %s150_s18 = sshll.u32 %s1252_s17, 4  ;;  %s151_s18 = int_to_ptr.vmem [resolvable:$true] %s150_s18 }
  0x24   : > { %s1603_s16 = scalar_select %p1378_p0, 1, 0 }
  0x25   : > { %p942_p1 = pneg %p1378_p0  ;;  %s1605_s2 = sld [smem:[#allocation19_spill]] }
  0x27   : > { %p1386_p2 = pnand %p942_p1, %p1353_p4 }
  0x29   : > { %p1065_p5 = pneg %p1386_p2 }
  0x2b   : > { %s1063_s22 = scalar_lea.hbm %s1605_s2, 16384 }
  0x2c   : > { %p1064_p3 = scmp.ne.s32.totalorder %s1605_s2, %s1063_s22  ;;  %p1070_p9 = scmp.lt.u32.totalorder %s1063_s22, %s1605_s2 }
  0x2e   : > { %p1066_p7 = pnand %p1065_p5, %p1064_p3 }
  0x30   : > { %p1067_p8 = pneg %p1066_p7 }
  0x32   : > { %p1072_p11 = pnand %p1070_p9, %p1067_p8 }
  0x34   : > { %1075 = shalt.err (!%p1072_p11)
}
  0x35   : > { %s1076_s10 = scalar_lea.vmem %s151_s18, 16384  ;;  %p1084_p10 = scmp.lt.s32.totalorder %s151_s18, %s151_s18 }
  0x36   : > { %p1077_p13 = scmp.ne.s32.totalorder %s151_s18, %s1076_s10  ;;  %p1085_p4 = scmp.lt.s32.totalorder %s1076_s10, %s1076_s10 }
  0x38   : > { %p1079_p1 = pnand %p1077_p13, %p1065_p5  ;;  %p1086_p6 = por %p1085_p4, %p1084_p10 }
  0x3a   : > { %p1080_p12 = pneg %p1079_p1 }
  0x3c   : > { %p1087_p0 = pnand %p1086_p6, %p1080_p12 }
  0x3e   : > { %1090 = shalt.err (!%p1087_p0)
}
  0x3f   : > { %s1253_s17 = smov 512   ;;  %s1254_s20 = smov 32  }
  0x40   : > { %945 = dma.hbm_to_vmem [thread:$0]  (!%p1386_p2), %s1605_s2, 16384, %s151_s18, [#allocation8], %s1253_s17, %s1253_s17, %s1254_s20  }
  0x41   : > { %s34_s23 = sadd.s32 1, %s1241_s6  ;;  %s37_s24 = sadd.s32 1, %s1245_s7 }
  0x42   : > { %p35_p4 = scmp.ge.s32.totalorder %s34_s23, 2  ;;  %s44_s28 = sadd.s32 1, %s1229_s30 }
  0x43   : > { %p51_p6 = scmp.ne.s32.totalorder %s1229_s30, %s1225_s29  ;;  %p52_p10 = scmp.eq.s32.totalorder %s1249_s8, 0 }
  0x44   : > { %s1629_s23 = smov (%p35_p4, %s34_s23), 0  ;;  %s1631_s24 = smov (!%p35_p4, %s37_s24), %s1245_s7 }
  0x45   : > { %1606 = sst [smem:[#allocation17_spill]] %s1629_s23  ;;  %s110_s19 = ssub.s32 %s1241_s6, %s1629_s23 }
  0x46   : > { %p39_p12 = scmp.ge.s32.totalorder %s1631_s24, 2  ;;  %p955_p0 = scmp.lt.s32.totalorder %s1249_s8, 4 }
  0x47   : > { %p1418_p2 = por %p52_p10, %p51_p6  ;;  %s167_s9 = sand.u32 1, %s1229_s30  }
  0x48   : > { %s1633_s24 = smov (%p39_p12, %s1631_s24), 0  ;;  %s788_s10 = sshll.u32 %s167_s9, 4 }
  0x49   : > { %1608 = sst [smem:[#allocation18_spill]] %s1633_s24  ;;  %s41_s17 = ssub.s32 %s1245_s7, %s1633_s24 }
  0x4a   : > { %p42_p3 = scmp.eq.s32.totalorder %s41_s17, 0  ;;  %s111_s20 = sor.u32 %s110_s19, %s41_s17 }
  0x4b   : > { %p112_p5 = scmp.eq.s32.totalorder %s111_s20, 0  ;;  %s801_s21 = sshll.u32 %s1245_s7, 8 }
  0x4c   : > { %s1429_s22 = scalar_select %p42_p3, %s1229_s30, %s44_s28  }
  0x4d   : > { %s1434_s2 = scalar_select %p112_p5, %s1217_s27, %s114_s12  }
  0x4e   : > { %s1439_s15 = scalar_lea.hbm %s1581_s1, %s801_s21  ;;  %s171_s25 = scalar_lea.vmem [#allocation4], %s788_s10 }
  0x4f   : > { %s178_s24 = sshll.u32 %s171_s25, 4  ;;  %p1447_p7 = pnand %p955_p0, %p1418_p2  ;;  %s1441_s24 = int_to_ptr.vmem [resolvable:$true] %s178_s24 }
  0x50   : > { %s1451_s12 = scalar_lea.sflag [#allocation5], %s167_s9  ;;  %s1091_s6 = scalar_lea.hbm %s1439_s15, 256 }
  0x51   : > { %p1092_p8 = scmp.ne.s32.totalorder %s1439_s15, %s1091_s6  ;;  %p1093_p9 = pneg %p1447_p7 }
  0x52   : > { %s1096_s19 = scalar_lea.hbm %s1581_s1, 512  ;;  %p1097_p1 = scmp.lt.u32.totalorder %s1439_s15, %s1581_s1 }
  0x53   : > { %p1094_p11 = pnand %p1093_p9, %p1092_p8  ;;  %p1098_p4 = scmp.lt.u32.totalorder %s1096_s19, %s1091_s6 }
  0x54   : > { %p1100_p10 = scmp.lt.u32.totalorder %s1091_s6, %s1439_s15 }
  0x55   : > { %p1095_p13 = pneg %p1094_p11  ;;  %p1099_p6 = por %p1098_p4, %p1097_p1 }
  0x57   : > { %p1101_p12 = por %p1100_p10, %p1099_p6 }
  0x59   : > { %p1102_p0 = pnand %p1101_p12, %p1095_p13 }
  0x5b   : > { %1105 = shalt.err (!%p1102_p0)
}
  0x5c   : > { %s1106_s9 = scalar_lea.vmem %s1441_s24, 256  ;;  %s1255_s17 = smov [#allocation4]  }
  0x5d   : > { %p1107_p2 = scmp.ne.s32.totalorder %s1441_s24, %s1106_s9  ;;  %s1111_s20 = sshll.u32 %s1255_s17, 4  ;;  %s1112_s20 = int_to_ptr.vmem [resolvable:$false] %s1111_s20 }
  0x5e   : > { %s1113_s21 = scalar_lea.vmem %s1112_s20, 512  ;;  %p1114_p8 = scmp.lt.s32.totalorder %s1441_s24, %s1112_s20 }
  0x5f   : > { %p1109_p3 = pnand %p1107_p2, %p1093_p9  ;;  %p1115_p11 = scmp.lt.s32.totalorder %s1113_s21, %s1106_s9 }
  0x61   : > { %p1110_p5 = pneg %p1109_p3  ;;  %p1116_p1 = por %p1115_p11, %p1114_p8 }
  0x63   : > { %p1117_p4 = pnand %p1116_p1, %p1110_p5 }
  0x65   : > { %1120 = shalt.err (!%p1117_p4)
}
  0x66   : > { %s1256_s6 = smov 128   ;;  %s1257_s25 = smov 8  }
  0x67   : > { %949 = dma.hbm_to_vmem [thread:$0]  (!%p1447_p7), %s1439_s15, 256, %s1441_s24, %s1451_s12, %s1256_s6, %s1256_s6, %s1257_s25  }
  0x68   : > { %p1610_p9 = scmp.ne.s32.totalorder %s1603_s16, 0 }
  0x69   : > { %s192_s23 = sand.u32 (!%p1610_p9), 1, %s1225_s29   ;;  %p1611_p13 = scmp.ne.s32.totalorder (!%p1610_p9), %s1599_s13, 0 }
  0x6a   : > { %190 = sbr.rel (%p1610_p9) target bundleno = 415 (0x19f), region = 32  ;;  %s1482_s19 = sshll.u32 (!%p1610_p9), %s192_s23, 4 }
  0x6b   : > { %s193_s18 = scalar_lea.sflag (!%p1610_p9), [#allocation5], %s192_s23  ;;  %s196_s10 = scalar_lea.vmem (!%p1610_p9), [#allocation4], %s1482_s19 }
  0x71   : > { %1196 = dma.done.wait (%p1611_p13), %s193_s18, 256  }
  0x72   : > { %1198 = vsyncadd (%p1611_p13), %s193_s18, 4294967040  ;;  %p1612_p6 = scmp.ne.s32.totalorder %s1598_s11, 0 }
  0x74   : > { %1200 = dma.done.wait (%p1612_p6), [#allocation8], 16384  }
  0x75   : > { %1202 = vsyncadd (%p1612_p6), [#allocation8], 4294950912  ;;  %v1258_v0 = vmov 0.0   ;;  %v294_v1 = vld [vmem:[#allocation7 + $0x208] sm:$0xff]  ;;  %v296_v3 = vld [vmem:[#allocation7 + $0x218] sm:$0xff]  ;;  %s1500_s11 = sld [smem:[#allocation3 + %s1233_s0]] }
  0x76   : > { %421 = vmatprep.mubr.f32.mxu0 %v1258_v0  ;;  %492 = vmatprep.mubr.f32.mxu1 %v1258_v0  ;;  %v298_v2 = vld [vmem:[#allocation7 + $0x228] sm:$0xff]  ;;  %v300_v5 = vld [vmem:[#allocation7 + $0x238] sm:$0xff]  ;;  %v293_v6 = vld [vmem:[#allocation7 + $0x200] sm:$0xff]  ;;  %s220_s16 = sand.u32 1, %s1213_s26   ;;  %s796_s9 = sshll.u32 %s1233_s0, 2 }
  0x77   : > { %v802_v4 = vpack.c.bf16 %v298_v2, %v294_v1  ;;  %v297_v7 = vld [vmem:[#allocation7 + $0x220] sm:$0xff]  ;;  %v834_v8 = vpack.c.bf16 %v300_v5, %v296_v3  ;;  %v295_v10 = vld [vmem:[#allocation7 + $0x210] sm:$0xff]  ;;  %v302_v12 = vld [vmem:[#allocation7 + $0x248] sm:$0xff]  ;;  %s794_s24 = sshll.u32 %s220_s16, 5  ;;  %s797_s17 = sshll.u32 %s1237_s5, 3 }
  0x78   : > { %v804_v9 = vpack.c.bf16 %v297_v7, %v293_v6  ;;  %v299_v11 = vld [vmem:[#allocation7 + $0x230] sm:$0xff]  ;;  %v306_v14 = vld [vmem:[#allocation7 + $0x268] sm:$0xff]  ;;  %v304_v15 = vld [vmem:[#allocation7 + $0x258] sm:$0xff]  ;;  %s684_s20 = sadd.s32 %s797_s17, %s796_s9  ;;  %s222_s6 = scalar_lea.vmem [#allocation9], %s794_s24 }
  0x79   : > { %803 = vmatprep.subr.bf16.mxu0 %v802_v4  ;;  %v836_v13 = vpack.c.bf16 %v299_v11, %v295_v10  ;;  %v308_v16 = vld [vmem:[#allocation7 + $0x278] sm:$0xff]  ;;  %835 = vmatprep.subr.bf16.mxu1 %v834_v8  ;;  %v806_v17 = vpack.c.bf16 %v306_v14, %v302_v12  ;;  %v301_v19 = vld [vmem:[#allocation7 + $0x240] sm:$0xff]  ;;  %v303_v21 = vld [vmem:[#allocation7 + $0x250] sm:$0xff]  ;;  %s798_s21 = sshll.u32 %s684_s20, 7  ;;  %s688_s25 = sshll.u32 %s222_s6, 4  ;;  %s1518_s25 = int_to_ptr.vmem [resolvable:$true] %s688_s25 }
  0x7a   : > { %805 = vmatpush1.bf16.msra.mxu0 %v804_v9  ;;  %v838_v18 = vpack.c.bf16 %v308_v16, %v304_v15  ;;  %v305_v20 = vld [vmem:[#allocation7 + $0x260] sm:$0xff]  ;;  %v307_v23 = vld [vmem:[#allocation7 + $0x270] sm:$0xff]  ;;  %v310_v24 = vld [vmem:[#allocation7 + $0x288] sm:$0xff]  ;;  %s1516_s23 = scalar_lea.hbm %s1584_s4, %s798_s21  ;;  %s672_s19 = scalar_lea.sflag [#allocation6], %s220_s16 }
  0x7b   : > { %837 = vmatpush1.bf16.msra.mxu1 %v836_v13  ;;  %v808_v22 = vpack.c.bf16 %v305_v20, %v301_v19  ;;  %v314_v25 = vld [vmem:[#allocation7 + $0x2a8] sm:$0xff]  ;;  %807 = vmatprep.subr.bf16.mxu0 %v806_v17  ;;  %v840_v26 = vpack.c.bf16 %v307_v23, %v303_v21  ;;  %v312_v28 = vld [vmem:[#allocation7 + $0x298] sm:$0xff]  ;;  %v309_v30 = vld [vmem:[#allocation7 + $0x280] sm:$0xff]  ;;  %s224_s13 = ssub.s32 8, %s1500_s11  ;;  %s1121_s18 = scalar_lea.vmem %s1518_s25, 512 }
  0x7c   : > { %839 = vmatprep.subr.bf16.mxu1 %v838_v18  ;;  %v810_v27 = vpack.c.bf16 %v314_v25, %v310_v24  ;;  %v316_v29 = vld [vmem:[#allocation7 + $0x2b8] sm:$0xff]  ;;  %v313_v32 = vld [vmem:[#allocation7 + $0x2a0] sm:$0xff]  ;;  %v311_v33 = vld [vmem:[#allocation7 + $0x290] sm:$0xff]  ;;  %s225_s15 = scalar_lea.vmem %s196_s10, %s224_s13 [#allocation4]  ;;  %p1122_p7 = scmp.ne.s32.totalorder %s1518_s25, %s1121_s18 }
  0x7d   : > { %v842_v31 = vpack.c.bf16 %v316_v29, %v312_v28  ;;  %v315_v34 = vld [vmem:[#allocation7 + $0x2b0] sm:$0xff]  ;;  %v812_v35 = vpack.c.bf16 %v313_v32, %v309_v30  ;;  %v318_v36 = vld [vmem:[#allocation7 + $0x2c8] sm:$0xff]  ;;  %v320_v38 = vld [vmem:[#allocation7 + $0x2d8] sm:$0xff]  ;;  %p1613_p10 = scmp.ne.s32.totalorder %s1600_s14, 0 }
  0x7e   : > { %809 = vmatpush1.bf16.msra.mxu0 %v808_v22  ;;  %v322_v37 = vld [vmem:[#allocation7 + $0x2e8] sm:$0xff]  ;;  %v844_v39 = vpack.c.bf16 %v315_v34, %v311_v33  ;;  %v324_v41 = vld [vmem:[#allocation7 + $0x2f8] sm:$0xff]  ;;  %v317_v42 = vld [vmem:[#allocation7 + $0x2c0] sm:$0xff] }
  0x7f   : > { %841 = vmatpush1.bf16.msra.mxu1 %v840_v26  ;;  %811 = vmatprep.subr.bf16.mxu0 %v810_v27  ;;  %v814_v40 = vpack.c.bf16 %v322_v37, %v318_v36  ;;  %v321_v43 = vld [vmem:[#allocation7 + $0x2e0] sm:$0xff]  ;;  %v846_v44 = vpack.c.bf16 %v324_v41, %v320_v38  ;;  %v319_v45 = vld [vmem:[#allocation7 + $0x2d0] sm:$0xff]  ;;  %v326_v47 = vld [vmem:[#allocation7 + $0x308] sm:$0xff]  ;;  %p1123_p12 = pnand %p1122_p7, %p1613_p10 }
  0x80   : > { %843 = vmatprep.subr.bf16.mxu1 %v842_v31  ;;  %v323_v46 = vld [vmem:[#allocation7 + $0x2f0] sm:$0xff]  ;;  %v330_v48 = vld [vmem:[#allocation7 + $0x328] sm:$0xff]  ;;  %v328_v49 = vld [vmem:[#allocation7 + $0x318] sm:$0xff]  ;;  %v816_v51 = vpack.c.bf16 %v321_v43, %v317_v42 }
  0x81   : > { %v332_v50 = vld [vmem:[#allocation7 + $0x338] sm:$0xff]  ;;  %v848_v52 = vpack.c.bf16 %v323_v46, %v319_v45  ;;  %v818_v53 = vpack.c.bf16 %v330_v48, %v326_v47  ;;  %v325_v54 = vld [vmem:[#allocation7 + $0x300] sm:$0xff]  ;;  %v327_v56 = vld [vmem:[#allocation7 + $0x310] sm:$0xff]  ;;  %p1124_p0 = pneg %p1123_p12 }
  0x82   : > { %813 = vmatpush1.bf16.msra.mxu0 %v812_v35  ;;  %v329_v55 = vld [vmem:[#allocation7 + $0x320] sm:$0xff]  ;;  %v850_v57 = vpack.c.bf16 %v332_v50, %v328_v49  ;;  %v331_v58 = vld [vmem:[#allocation7 + $0x330] sm:$0xff]  ;;  %v334_v59 = vld [vmem:[#allocation7 + $0x348] sm:$0xff] }
  0x83   : > { %845 = vmatpush1.bf16.msra.mxu1 %v844_v39  ;;  %815 = vmatprep.subr.bf16.mxu0 %v814_v40  ;;  %v338_v60 = vld [vmem:[#allocation7 + $0x368] sm:$0xff]  ;;  %v336_v61 = vld [vmem:[#allocation7 + $0x358] sm:$0xff]  ;;  %v820_v63 = vpack.c.bf16 %v329_v55, %v325_v54  ;;  %v852_v1 = vpack.c.bf16 %v331_v58, %v327_v56  ;;  %v333_v3 = vld [vmem:[#allocation7 + $0x340] sm:$0xff] }
  0x84   : > { %847 = vmatprep.subr.bf16.mxu1 %v846_v44  ;;  %v340_v62 = vld [vmem:[#allocation7 + $0x378] sm:$0xff]  ;;  %v822_v2 = vpack.c.bf16 %v338_v60, %v334_v59  ;;  %v337_v4 = vld [vmem:[#allocation7 + $0x360] sm:$0xff]  ;;  %v335_v5 = vld [vmem:[#allocation7 + $0x350] sm:$0xff] }
  0x85   : > { %v854_v6 = vpack.c.bf16 %v340_v62, %v336_v61  ;;  %v339_v7 = vld [vmem:[#allocation7 + $0x370] sm:$0xff]  ;;  %v342_v8 = vld [vmem:[#allocation7 + $0x388] sm:$0xff]  ;;  %v344_v10 = vld [vmem:[#allocation7 + $0x398] sm:$0xff]  ;;  %v824_v12 = vpack.c.bf16 %v337_v4, %v333_v3 }
  0x86   : > { %817 = vmatpush1.bf16.msra.mxu0 %v816_v51  ;;  %v346_v9 = vld [vmem:[#allocation7 + $0x3a8] sm:$0xff]  ;;  %v348_v11 = vld [vmem:[#allocation7 + $0x3b8] sm:$0xff]  ;;  %v856_v13 = vpack.c.bf16 %v339_v7, %v335_v5  ;;  %v341_v15 = vld [vmem:[#allocation7 + $0x380] sm:$0xff] }
  0x87   : > { %849 = vmatpush1.bf16.msra.mxu1 %v848_v52  ;;  %819 = vmatprep.subr.bf16.mxu0 %v818_v53  ;;  %v826_v14 = vpack.c.bf16 %v346_v9, %v342_v8  ;;  %v345_v16 = vld [vmem:[#allocation7 + $0x3a0] sm:$0xff]  ;;  %v343_v17 = vld [vmem:[#allocation7 + $0x390] sm:$0xff]  ;;  %v858_v18 = vpack.c.bf16 %v348_v11, %v344_v10  ;;  %v350_v20 = vld [vmem:[#allocation7 + $0x3c8] sm:$0xff] }
  0x88   : > { %851 = vmatprep.subr.bf16.mxu1 %v850_v57  ;;  %v347_v19 = vld [vmem:[#allocation7 + $0x3b0] sm:$0xff]  ;;  %v354_v21 = vld [vmem:[#allocation7 + $0x3e8] sm:$0xff]  ;;  %v352_v22 = vld [vmem:[#allocation7 + $0x3d8] sm:$0xff]  ;;  %v828_v24 = vpack.c.bf16 %v345_v16, %v341_v15 }
  0x89   : > { %v356_v23 = vld [vmem:[#allocation7 + $0x3f8] sm:$0xff]  ;;  %v860_v25 = vpack.c.bf16 %v347_v19, %v343_v17  ;;  %v830_v26 = vpack.c.bf16 %v354_v21, %v350_v20  ;;  %v349_v27 = vld [vmem:[#allocation7 + $0x3c0] sm:$0xff]  ;;  %v351_v29 = vld [vmem:[#allocation7 + $0x3d0] sm:$0xff] }
  0x8a   : > { %821 = vmatpush1.bf16.msra.mxu0 %v820_v63  ;;  %v353_v28 = vld [vmem:[#allocation7 + $0x3e0] sm:$0xff]  ;;  %v862_v30 = vpack.c.bf16 %v356_v23, %v352_v22  ;;  %v355_v31 = vld [vmem:[#allocation7 + $0x3f0] sm:$0xff]  ;;  %v228_v32 = vld [vmem:[#allocation7 + $0x8] sm:$0xff] }
  0x8b   : > { %853 = vmatpush1.bf16.msra.mxu1 %v852_v1  ;;  %823 = vmatprep.subr.bf16.mxu0 %v822_v2  ;;  %v232_v33 = vld [vmem:[#allocation7 + $0x28] sm:$0xff]  ;;  %v230_v34 = vld [vmem:[#allocation7 + $0x18] sm:$0xff]  ;;  %v832_v36 = vpack.c.bf16 %v353_v28, %v349_v27  ;;  %v864_v37 = vpack.c.bf16 %v355_v31, %v351_v29  ;;  %v227_v39 = vld [vmem:[#allocation7] sm:$0xff] }
  0x8c   : > { %855 = vmatprep.subr.bf16.mxu1 %v854_v6  ;;  %v234_v35 = vld [vmem:[#allocation7 + $0x38] sm:$0xff]  ;;  %v866_v38 = vpack.c.bf16 %v232_v33, %v228_v32  ;;  %v231_v40 = vld [vmem:[#allocation7 + $0x20] sm:$0xff]  ;;  %v229_v41 = vld [vmem:[#allocation7 + $0x10] sm:$0xff] }
  0x8d   : > { %v898_v42 = vpack.c.bf16 %v234_v35, %v230_v34  ;;  %v233_v43 = vld [vmem:[#allocation7 + $0x30] sm:$0xff]  ;;  %v236_v44 = vld [vmem:[#allocation7 + $0x48] sm:$0xff]  ;;  %v238_v46 = vld [vmem:[#allocation7 + $0x58] sm:$0xff]  ;;  %v868_v49 = vpack.c.bf16 %v231_v40, %v227_v39 }
  0x8e   : > { %825 = vmatpush1.bf16.msra.mxu0 %v824_v12  ;;  %v240_v45 = vld [vmem:[#allocation7 + $0x68] sm:$0xff]  ;;  %v242_v47 = vld [vmem:[#allocation7 + $0x78] sm:$0xff]  ;;  %v900_v50 = vpack.c.bf16 %v233_v43, %v229_v41  ;;  %v235_v52 = vld [vmem:[#allocation7 + $0x40] sm:$0xff] }
  0x8f   : > { %857 = vmatpush1.bf16.msra.mxu1 %v856_v13  ;;  %827 = vmatprep.subr.bf16.mxu0 %v826_v14  ;;  %v291_v48 = vld [vmem:[%s196_s10 + $0x8] sm:$0xff]  ;;  %v870_v51 = vpack.c.bf16 %v240_v45, %v236_v44  ;;  %v239_v53 = vld [vmem:[#allocation7 + $0x60] sm:$0xff]  ;;  %v237_v54 = vld [vmem:[#allocation7 + $0x50] sm:$0xff]  ;;  %v902_v55 = vpack.c.bf16 %v242_v47, %v238_v46  ;;  %s1259_s10 = smov [#allocation9]  }
  0x90   : > { %859 = vmatprep.subr.bf16.mxu1 %v858_v18  ;;  %v241_v56 = vld [vmem:[#allocation7 + $0x70] sm:$0xff]  ;;  %v244_v57 = vld [vmem:[#allocation7 + $0x88] sm:$0xff]  ;;  %v246_v59 = vld [vmem:[#allocation7 + $0x98] sm:$0xff]  ;;  %v872_v61 = vpack.c.bf16 %v239_v53, %v235_v52  ;;  %s1125_s11 = sshll.u32 %s1259_s10, 4  ;;  %s1126_s11 = int_to_ptr.vmem [resolvable:$false] %s1125_s11 }
  0x91   : > { %v248_v58 = vld [vmem:[#allocation7 + $0xa8] sm:$0xff]  ;;  %v250_v60 = vld [vmem:[#allocation7 + $0xb8] sm:$0xff]  ;;  %v904_v62 = vpack.c.bf16 %v241_v56, %v237_v54  ;;  %v243_v1 = vld [vmem:[#allocation7 + $0x80] sm:$0xff]  ;;  %s1127_s13 = scalar_lea.vmem %s1126_s11, 1024  ;;  %p1128_p2 = scmp.lt.s32.totalorder %s1518_s25, %s1126_s11 }
  0x92   : > { %829 = vmatpush1.bf16.msra.mxu0 %v828_v24  ;;  %v874_v63 = vpack.c.bf16 %v248_v58, %v244_v57  ;;  %v247_v2 = vld [vmem:[#allocation7 + $0xa0] sm:$0xff]  ;;  %v245_v3 = vld [vmem:[#allocation7 + $0x90] sm:$0xff]  ;;  %v906_v4 = vpack.c.bf16 %v250_v60, %v246_v59  ;;  %v252_v6 = vld [vmem:[#allocation7 + $0xc8] sm:$0xff]  ;;  %p1129_p3 = scmp.lt.s32.totalorder %s1127_s13, %s1121_s18 }
  0x93   : > { %861 = vmatpush1.bf16.msra.mxu1 %v860_v25  ;;  %831 = vmatprep.subr.bf16.mxu0 %v830_v26  ;;  %v249_v5 = vld [vmem:[#allocation7 + $0xb0] sm:$0xff]  ;;  %v256_v7 = vld [vmem:[#allocation7 + $0xe8] sm:$0xff]  ;;  %v254_v8 = vld [vmem:[#allocation7 + $0xd8] sm:$0xff]  ;;  %v876_v10 = vpack.c.bf16 %v247_v2, %v243_v1 }
  0x94   : > { %863 = vmatprep.subr.bf16.mxu1 %v862_v30  ;;  %v258_v9 = vld [vmem:[#allocation7 + $0xf8] sm:$0xff]  ;;  %v908_v11 = vpack.c.bf16 %v249_v5, %v245_v3  ;;  %v878_v12 = vpack.c.bf16 %v256_v7, %v252_v6  ;;  %v251_v13 = vld [vmem:[#allocation7 + $0xc0] sm:$0xff]  ;;  %v253_v15 = vld [vmem:[#allocation7 + $0xd0] sm:$0xff]  ;;  %v643_v5 = vlaneseq  ;;  %p1130_p5 = por %p1129_p3, %p1128_p2 }
  0x95   : > { %v255_v14 = vld [vmem:[#allocation7 + $0xe0] sm:$0xff]  ;;  %v910_v16 = vpack.c.bf16 %v258_v9, %v254_v8  ;;  %v257_v17 = vld [vmem:[#allocation7 + $0xf0] sm:$0xff]  ;;  %v260_v18 = vld [vmem:[#allocation7 + $0x108] sm:$0xff] }
  0x96   : > { %833 = vmatpush1.bf16.msra.mxu0 %v832_v36  ;;  %v264_v19 = vld [vmem:[#allocation7 + $0x128] sm:$0xff]  ;;  %v262_v20 = vld [vmem:[#allocation7 + $0x118] sm:$0xff]  ;;  %v880_v22 = vpack.c.bf16 %v255_v14, %v251_v13  ;;  %v259_v24 = vld [vmem:[#allocation7 + $0x100] sm:$0xff]  ;;  %v644_v6 = vshrl.u32 %v643_v5, 7  ;;  %p1131_p8 = pnand %p1130_p5, %p1124_p0 }
  0x97   : > { %865 = vmatpush1.bf16.msra.mxu1 %v864_v37  ;;  %867 = vmatprep.subr.bf16.mxu0 %v866_v38  ;;  %v266_v21 = vld [vmem:[#allocation7 + $0x138] sm:$0xff]  ;;  %v882_v23 = vpack.c.bf16 %v264_v19, %v260_v18  ;;  %v263_v25 = vld [vmem:[#allocation7 + $0x120] sm:$0xff]  ;;  %v261_v26 = vld [vmem:[#allocation7 + $0x110] sm:$0xff] }
  0x98   : > { %899 = vmatprep.subr.bf16.mxu1 %v898_v42  ;;  %v914_v27 = vpack.c.bf16 %v266_v21, %v262_v20  ;;  %v265_v28 = vld [vmem:[#allocation7 + $0x130] sm:$0xff]  ;;  %v268_v29 = vld [vmem:[#allocation7 + $0x148] sm:$0xff]  ;;  %v270_v31 = vld [vmem:[#allocation7 + $0x158] sm:$0xff]  ;;  %v884_v33 = vpack.c.bf16 %v263_v25, %v259_v24  ;;  %v645_v7 = vsub.s32 0, %v644_v6  ;;  %v653_v9 = vsub.s32 2, %v644_v6 }
  0x99   : > { %422 = vmatmul.mubr.f32.vlgmr.msra.gmra.mrb[0].mxu0 %v291_v48  ;;  %v272_v30 = vld [vmem:[#allocation7 + $0x168] sm:$0xff]  ;;  %v274_v32 = vld [vmem:[#allocation7 + $0x178] sm:$0xff]  ;;  %v916_v34 = vpack.c.bf16 %v265_v28, %v261_v26  ;;  %v267_v36 = vld [vmem:[#allocation7 + $0x140] sm:$0xff] }
  0x9a   : > { %493 = vmatmul.mubr.f32.vlgmr.msra.gmra.mrb[0].mxu1 %v291_v48  ;;  %869 = vmatpush1.bf16.msra.mxu0 %v868_v49  ;;  %v886_v35 = vpack.c.bf16 %v272_v30, %v268_v29  ;;  %v271_v37 = vld [vmem:[#allocation7 + $0x160] sm:$0xff]  ;;  %v269_v38 = vld [vmem:[#allocation7 + $0x150] sm:$0xff]  ;;  %v918_v39 = vpack.c.bf16 %v274_v32, %v270_v31  ;;  %v276_v41 = vld [vmem:[#allocation7 + $0x188] sm:$0xff] }
  0x9b   : > { %901 = vmatpush1.bf16.msra.mxu1 %v900_v50  ;;  %871 = vmatprep.subr.bf16.mxu0 %v870_v51  ;;  %v273_v40 = vld [vmem:[#allocation7 + $0x170] sm:$0xff]  ;;  %v280_v42 = vld [vmem:[#allocation7 + $0x1a8] sm:$0xff]  ;;  %v278_v43 = vld [vmem:[#allocation7 + $0x198] sm:$0xff]  ;;  %v888_v45 = vpack.c.bf16 %v271_v37, %v267_v36 }
  0x9c   : > { %903 = vmatprep.subr.bf16.mxu1 %v902_v55  ;;  %563 = vmatprep.mubr.f32.mxu0 %v1258_v0  ;;  %v282_v44 = vld [vmem:[#allocation7 + $0x1b8] sm:$0xff]  ;;  %v920_v46 = vpack.c.bf16 %v273_v40, %v269_v38  ;;  %v890_v47 = vpack.c.bf16 %v280_v42, %v276_v41  ;;  %v275_v48 = vld [vmem:[#allocation7 + $0x180] sm:$0xff]  ;;  %v277_v50 = vld [vmem:[#allocation7 + $0x190] sm:$0xff] }
  0x9d   : > { %634 = vmatprep.mubr.f32.mxu1 %v1258_v0  ;;  %v912_v0 = vpack.c.bf16 %v257_v17, %v253_v15  ;;  %v279_v49 = vld [vmem:[#allocation7 + $0x1a0] sm:$0xff]  ;;  %v922_v51 = vpack.c.bf16 %v282_v44, %v278_v43  ;;  %v281_v52 = vld [vmem:[#allocation7 + $0x1b0] sm:$0xff]  ;;  %v284_v53 = vld [vmem:[#allocation7 + $0x1c8] sm:$0xff] }
  0x9e   : > { %873 = vmatpush1.bf16.msra.mxu0 %v872_v61  ;;  %v288_v54 = vld [vmem:[#allocation7 + $0x1e8] sm:$0xff]  ;;  %v286_v55 = vld [vmem:[#allocation7 + $0x1d8] sm:$0xff]  ;;  %v892_v57 = vpack.c.bf16 %v279_v49, %v275_v48  ;;  %v924_v58 = vpack.c.bf16 %v281_v52, %v277_v50  ;;  %v283_v60 = vld [vmem:[#allocation7 + $0x1c0] sm:$0xff] }
  0x9f   : > { %905 = vmatpush1.bf16.msra.mxu1 %v904_v62  ;;  %875 = vmatprep.subr.bf16.mxu0 %v874_v63  ;;  %v290_v56 = vld [vmem:[#allocation7 + $0x1f8] sm:$0xff]  ;;  %v894_v59 = vpack.c.bf16 %v288_v54, %v284_v53  ;;  %v287_v61 = vld [vmem:[#allocation7 + $0x1e0] sm:$0xff]  ;;  %v285_v63 = vld [vmem:[#allocation7 + $0x1d0] sm:$0xff] }
  0xa0   : > { %907 = vmatprep.subr.bf16.mxu1 %v906_v4  ;;  %v926_v62 = vpack.c.bf16 %v290_v56, %v286_v55  ;;  %v289_v1 = vld [vmem:[#allocation7 + $0x1f0] sm:$0xff]  ;;  %v896_v2 = vpack.c.bf16 %v287_v61, %v283_v60  ;;  %v226_v4 = vld [vmem:[%s225_s15] sm:$0xff] }
  0xa1   : > { %v928_v3 = vpack.c.bf16 %v289_v1, %v285_v63  ;;  %v641_v8 = vld [vmem:[%s1583_s3] sm:$0xf] }
  0xa2   : > { %877 = vmatpush1.bf16.msra.mxu0 %v876_v10  ;;  %v649_v10 = vsub.s32 1, %v644_v6  ;;  %v654_v13 = vrot.slane %v641_v8, %v653_v9 }
  0xa3   : > { %909 = vmatpush1.bf16.msra.mxu1 %v908_v11  ;;  %879 = vmatprep.subr.bf16.mxu0 %v878_v12  ;;  %v657_v11 = vsub.s32 3, %v644_v6  ;;  %v646_v12 = vrot.slane %v641_v8, %v645_v7 }
  0xa4   : > { %911 = vmatprep.subr.bf16.mxu1 %v910_v16  ;;  %v650_v14 = vrot.slane %v641_v8, %v649_v10 }
  0xa5   : > { %v658_v15 = vrot.slane %v641_v8, %v657_v11 }
  0xa6   : > { %881 = vmatpush1.bf16.msra.mxu0 %v880_v22 }
  0xa7   : > { %913 = vmatpush1.bf16.msra.mxu1 %v912_v0  ;;  %883 = vmatprep.subr.bf16.mxu0 %v882_v23 }
  0xa8   : > { %915 = vmatprep.subr.bf16.mxu1 %v914_v27 }
  0xaa   : > { %885 = vmatpush1.bf16.msra.mxu0 %v884_v33 }
  0xab   : > { %917 = vmatpush1.bf16.msra.mxu1 %v916_v34  ;;  %887 = vmatprep.subr.bf16.mxu0 %v886_v35 }
  0xac   : > { %919 = vmatprep.subr.bf16.mxu1 %v918_v39 }
  0xae   : > { %889 = vmatpush1.bf16.msra.mxu0 %v888_v45 }
  0xaf   : > { %921 = vmatpush1.bf16.msra.mxu1 %v920_v46  ;;  %891 = vmatprep.subr.bf16.mxu0 %v890_v47 }
  0xb0   : > { %923 = vmatprep.subr.bf16.mxu1 %v922_v51 }
  0xb2   : > { %893 = vmatpush1.bf16.msra.mxu0 %v892_v57 }
  0xb3   : > { %925 = vmatpush1.bf16.msra.mxu1 %v924_v58  ;;  %895 = vmatprep.subr.bf16.mxu0 %v894_v59 }
  0xb4   : > { %927 = vmatprep.subr.bf16.mxu1 %v926_v62 }
  0xb6   : > { %897 = vmatpush1.bf16.msra.mxu0 %v896_v2 }
  0xb7   : > { %929 = vmatpush1.bf16.msra.mxu1 %v928_v3 }
  0xb9   : > { %564 = vmatmul.mubr.f32.vlgmr.msra.gmra.mrb[0].mxu0 %v226_v4 }
  0xba   : > { %635 = vmatmul.mubr.f32.vlgmr.msra.gmra.mrb[0].mxu1 %v226_v4 }
 0x18c   : > { %v565_v16 = vpop.f32.mrb[0].mxu0 }
 0x18d   : > { %v663_v17 = vadd.f32 %v646_v12, %v565_v16  ;;  %v636_v18 = vpop.f32.mrb[0].mxu1  ;;  %v567_v19 = vpop.f32.mrb[1].mxu0 }
 0x18e   : > { %v665_v20 = vadd.f32 %v654_v13, %v636_v18  ;;  %v664_v21 = vadd.f32 %v650_v14, %v567_v19  ;;  %v638_v22 = vpop.f32.mrb[1].mxu1 }
 0x18f   : > { %667 = vst [vmem:[%s222_s6] sm:$0xff] %v663_v17  ;;  %v666_v0 = vadd.f32 %v658_v15, %v638_v22 }
 0x190   : > { %669 = vst [vmem:[%s222_s6 + $0x10] sm:$0xff] %v665_v20  ;;  %668 = vst [vmem:[%s222_s6 + $0x8] sm:$0xff] %v664_v21 }
 0x191   : > { %670 = vst [vmem:[%s222_s6 + $0x18] sm:$0xff] %v666_v0 }
 0x192   : > { %1134 = shalt.err (!%p1131_p8)
}
 0x193   : > { %s1135_s15 = scalar_lea.hbm %s1516_s23, 512  ;;  %s1139_s28 = scalar_lea.hbm %s1584_s4, 2048 }
 0x194   : > { %p1136_p11 = scmp.ne.s32.totalorder %s1516_s23, %s1135_s15  ;;  %p1140_p9 = scmp.lt.u32.totalorder %s1516_s23, %s1584_s4 }
 0x195   : > { %p1141_p13 = scmp.lt.u32.totalorder %s1139_s28, %s1135_s15  ;;  %p1143_p7 = scmp.lt.u32.totalorder %s1135_s15, %s1516_s23 }
 0x196   : > { %p1137_p1 = pnand %p1136_p11, %p1613_p10 }
 0x197   : > { %p1142_p6 = por %p1141_p13, %p1140_p9 }
 0x198   : > { %p1138_p4 = pneg %p1137_p1 }
 0x199   : > { %p1144_p12 = por %p1143_p7, %p1142_p6 }
 0x19b   : > { %p1145_p0 = pnand %p1144_p12, %p1138_p4 }
 0x19d   : > { %1148 = shalt.err (!%p1145_p0)
}
 0x19e   : > { %940 = dma.vmem_to_hbm [thread:$0]  (%p1613_p10), %s1518_s25, 512, %s1516_s23, %s672_s19  }
 0x19f PF: > { %s1614_s17 = sld [smem:[#allocation14_spill]]  ;;  %s1615_s20 = sld [smem:[#allocation16_spill]] }
 0x1a0   : > { %p957_p2 = scmp.ge.s32.totalorder %s1249_s8, 2 }
 0x1a5   : > { %s700_s21 = sand.u32 1, %s1614_s17   ;;  %p1616_p3 = scmp.ne.s32.totalorder %s1615_s20, 0 }
 0x1a6   : > { %s701_s6 = scalar_lea.sflag [#allocation6], %s700_s21 }
 0x1a7   : > { %p951_p5 = pnand %p957_p2, %p1616_p3 }
 0x1a9   : > { %1204 = dma.done.wait (!%p951_p5), %s701_s6, 512  }
 0x1aa   : > { %1206 = vsyncadd (!%p951_p5), %s701_s6, 4294966784  ;;  %s25_s8 = sadd.s32 1, %s1249_s8   ;;  %s1617_s0 = sld [smem:[#allocation15_spill]] }
 0x1ab   : > { %p22_p8 = scmp.ge.s32.totalorder %s25_s8, 6   ;;  %s1618_s6 = sld [smem:[#allocation17_spill]] }
 0x1ac   : > { %s1619_s14 = sld [smem:[#allocation18_spill]]  ;;  %s1620_s25 = smov %s1213_s26 }
 0x1ad   : > { %s1621_s26 = smov %s1217_s27  ;;  %s1622_s27 = smov %s1434_s2 }
 0x1ae   : > { %s1623_s28 = smov %s1225_s29  ;;  %s1624_s29 = smov %s1229_s30 }
 0x1af   : > { %s1625_s30 = smov %s1429_s22  ;;  %s1626_s5 = smov %s1245_s7 }
 0x1b0   :  { %24 = sbr.rel (!%p22_p8) target bundleno = 22 (0x16), region = 83 }
 0x1b2   : > { %s1627_s7 = smov %s1619_s14 }
 0x1b7   :  { %706 = vsyncpa [#allocation5], 1 }
 0x1b8   :  { %708 = vsyncpa [#allocation5 + $0x1], 1 }
 0x1b9   :  { %709 = vsyncpa [#allocation8], 1 }
 0x1ba   :  { %710 = vsyncpa [#allocation6], 1 }
 0x1bb   :  { %712 = vsyncpa [#allocation6 + $0x1], 1 }

</bundles_post_ra>
